<compile_context>
chip_gen: v7x
topology: tpu7x:2x2x1
jax: 0.10.0
libtpu: 0.0.40
codegen_flags: <defaults>
</compile_context>

<pallas_src>
import functools

import jax
import jax.numpy as jnp
import numpy as np
from jax.experimental import pallas as pl
from jax.experimental.pallas import tpu as pltpu


def _round_up(x: int, m: int) -> int:
    return ((x + m - 1) // m) * m


def _round_down(x: int, m: int) -> int:
    return (x // m) * m


def _vmem_capacity_bytes() -> int:
    """Per-TensorCore VMEM capacity; conservative fallback if the query fails."""
    try:
        cap = int(getattr(pltpu.get_tpu_info(), "vmem_capacity_bytes", 0))
        if cap > 0:
            return cap
    except Exception:
        pass
    return 64 << 20  # v7x per-TC VMEM — safe lower bound for all generations


def _fold_to_128(x):
    """(TB, TS) -> (TB, 128): sum 128-wide lane groups.

    Slices land exactly on vreg (lane) boundaries, so this is pure VPU adds —
    no XLU cross-lane reduce. Pairwise tree keeps the dependency chain short.
    """
    ts = x.shape[-1]
    parts = [x[:, j * 128:(j + 1) * 128] for j in range(ts // 128)]
    while len(parts) > 1:
        nxt = [parts[j] + parts[j + 1] for j in range(0, len(parts) - 1, 2)]
        if len(parts) % 2:
            nxt.append(parts[-1])
        parts = nxt
    return parts[0]


def _policy_loss_kernel(*refs, clip_eps: float, seq_len: int, ts: int,
                        n_sq: int, has_mask: bool):
    if has_mask:
        logp_ref, old_ref, adv_ref, mask_ref, out_ref = refs
    else:
        logp_ref, old_ref, adv_ref, out_ref = refs
        mask_ref = None

    # Zero the packed accumulator at the start of every reduction sweep.
    # Axis 2 is the innermost ("arbitrary") reduction axis, so this runs once
    # per output block before any accumulation.
    @pl.when(pl.program_id(2) == 0)
    def _():
        out_ref[...] = jnp.zeros_like(out_ref)

    # Global column offset of this tile. NOTE: uses the *unclamped* column
    # block index, so a clamped duplicate DMA block (odd number of S blocks
    # split across 2 parallel groups) gets col_start >= seq_len and is fully
    # masked out below (contributes exactly zero).
    col_block = pl.program_id(1) * n_sq + pl.program_id(2)
    col_start = col_block * ts
    col_ids = jax.lax.broadcasted_iota(jnp.int32, logp_ref.shape, 1) + col_start
    in_bounds = col_ids < seq_len

    logp = logp_ref[...].astype(jnp.float32)
    old_logp = old_ref[...].astype(jnp.float32)
    # Zero out-of-bounds tail lanes: they hold garbage (no padding pass), and
    # garbage * 0 could be NaN if left unmasked.
    adv = jnp.where(in_bounds, adv_ref[...].astype(jnp.float32), 0.0)
    if has_mask:
        mask = jnp.where(in_bounds, mask_ref[...].astype(jnp.float32), 0.0)
    else:
        mask = in_bounds.astype(jnp.float32)  # mask=None -> all-ones mask

    # Mask the log-prob delta BEFORE exp: exp(garbage) can be inf and
    # inf * 0 = NaN would poison the row sums.
    diff = jnp.where(in_bounds, logp - old_logp, 0.0)
    ratio = jnp.exp(diff)  # EUP slot — effectively free under the HBM roofline
    surr1 = ratio * adv
    surr2 = jnp.clip(ratio, 1.0 - clip_eps, 1.0 + clip_eps) * adv
    loss = -jnp.minimum(surr1, surr2)

    # Lane-wise partial accumulation into a lane-dense (TB, 3*128) slab:
    # cols [0,128) = masked loss, [128,256) = masked ratio, [256,384) = mask.
    out_ref[...] += jnp.concatenate(
        [_fold_to_128(loss * mask),
         _fold_to_128(ratio * mask),
         _fold_to_128(mask)],
        axis=-1)


def policy_loss(log_probs, old_log_probs, advantages, action_mask=None, *,
                clip_eps: float = 0.2, token_level_mean: bool = False,
                return_ratio: bool = False):
    """PPO clipped-surrogate policy loss. Returns (loss, ratio|loss)."""
    B, S = log_probs.shape
    has_mask = action_mask is not None

    streams = [log_probs, old_log_probs, advantages]
    if has_mask:
        streams.append(action_mask)
    bytes_per_token = sum(jnp.dtype(x.dtype).itemsize for x in streams)

    # ---- tile / grid selection ---------------------------------------------
    # Batch tile: keep >= 2 "parallel" batch blocks whenever B allows so the
    # second TensorCore on v7x has work (no cost on single-TC v5e/v6e).
    TB = min(_round_up(B, 8), 256)
    n_b = pl.cdiv(B, TB)
    if n_b == 1 and _round_up(B, 8) >= 16:
        TB = _round_up(_round_up(B, 8) // 2, 8)
        n_b = pl.cdiv(B, TB)
    # If batch alone cannot feed two cores, split S into 2 parallel groups,
    # each with its own accumulator column-group (merged in the epilogue).
    n_sp = 2 if (n_b == 1 and S > 128) else 1

    # Sequence tile: sized by bytes — as large as possible (amortize the
    # ~0.35us per-step overhead) while the double-buffered working set stays
    # within a per-generation VMEM budget (v7x: 64 MiB/TC, v5e/v6e: 128 MiB).
    tile_budget = min(max(_vmem_capacity_bytes() // 3, 16 << 20), 48 << 20)
    ts_from_budget = max(
        128, _round_down((tile_budget // (2 * bytes_per_token)) // TB, 128))
    ts_from_split = _round_up(pl.cdiv(S, n_sp), 128)  # ensure >= n_sp col blocks
    TS = max(128, min(_round_up(S, 128), ts_from_budget, ts_from_split))

    n_s_total = pl.cdiv(S, TS)
    n_sq = pl.cdiv(n_s_total, n_sp)
    grid = (n_b, n_sp, n_sq)  # (parallel, parallel, reduction-last)

    # ---- specs ---------------------------------------------------------------
    def in_map(i, p, s):
        cb = p * n_sq + s
        # Clamp so the DMA never starts past the array; a duplicated block is
        # zeroed by the in-kernel tail mask (which uses the unclamped index).
        return (i, jnp.minimum(cb, n_s_total - 1))

    in_spec = pl.BlockSpec((TB, TS), in_map)
    out_spec = pl.BlockSpec((TB, 384), lambda i, p, s: (i, p))  # resident over s

    in_bytes = 2 * TB * TS * bytes_per_token        # double-buffered inputs
    out_bytes = 2 * TB * 384 * 4
    vmem_limit = max(32 << 20, in_bytes + out_bytes + (4 << 20))

    tokens = B * S
    cost = pl.CostEstimate(
        flops=12 * tokens, transcendentals=tokens,
        bytes_accessed=tokens * bytes_per_token + B * n_sp * 384 * 4)

    kernel = functools.partial(
        _policy_loss_kernel, clip_eps=float(clip_eps), seq_len=S, ts=TS,
        n_sq=n_sq, has_mask=has_mask)

    packed = pl.pallas_call(
        kernel,
        out_shape=jax.ShapeDtypeStruct((B, n_sp * 384), jnp.float32),
        grid_spec=pltpu.PrefetchScalarGridSpec(
            num_scalar_prefetch=0, grid=grid,
            in_specs=[in_spec] * len(streams), out_specs=out_spec),
        compiler_params=pltpu.CompilerParams(
            dimension_semantics=("parallel", "parallel", "arbitrary"),
            vmem_limit_bytes=int(vmem_limit)),
        cost_estimate=cost,
    )(*streams)

    # ---- tiny JAX epilogue: fold lane-dense partials to 3 scalars per row ----
    sums = packed.reshape(B, n_sp, 3, 128).sum(axis=(1, 3))  # (B, 3)
    loss_sum, ratio_sum, mask_sum = sums[:, 0], sums[:, 1], sums[:, 2]

    if token_level_mean and has_mask:
        total_mask = jnp.sum(mask_sum)
        loss = jnp.sum(loss_sum) / total_mask
        ratio = jnp.sum(ratio_sum) / total_mask
    else:
        # masked_mean(x, m, dim=-1) = sum(x*m,-1)/(sum(m,-1)+1e-8), then .mean()
        loss = jnp.mean(loss_sum / (mask_sum + 1e-8))
        ratio = ratio_sum / (mask_sum + 1e-8)  # per-row, matching the module

    return (loss, ratio if return_ratio else loss)


def _reference(log_probs, old_log_probs, advantages, action_mask,
               clip_eps=0.2, token_level_mean=False):
    lp = np.asarray(log_probs).astype(np.float32)
    olp = np.asarray(old_log_probs).astype(np.float32)
    adv = np.asarray(advantages).astype(np.float32)
    has_mask = action_mask is not None
    mask = (np.asarray(action_mask).astype(np.float32) if has_mask
            else np.ones_like(lp))
    ratio = np.exp(lp - olp)
    surr1 = ratio * adv
    surr2 = np.clip(ratio, 1 - clip_eps, 1 + clip_eps) * adv
    loss = -np.minimum(surr1, surr2)
    if token_level_mean and has_mask:
        l = np.sum(loss * mask) / np.sum(mask)
        r = np.sum(ratio * mask) / np.sum(mask)
    else:
        l = np.mean(np.sum(loss * mask, -1) / (np.sum(mask, -1) + 1e-8))
        r = np.sum(ratio * mask, -1) / (np.sum(mask, -1) + 1e-8)
    return l, r


if __name__ == "__main__":

    def check(B, S, dtype, token_level_mean, return_ratio, use_mask, seed,
              tol=2e-5):
        ks = jax.random.split(jax.random.PRNGKey(seed), 4)
        lp = (jax.random.normal(ks[0], (B, S), jnp.float32) * 0.1 - 1.0).astype(dtype)
        olp = (jax.random.normal(ks[1], (B, S), jnp.float32) * 0.1 - 1.0).astype(dtype)
        adv = jax.random.normal(ks[2], (B, S), jnp.float32).astype(dtype)
        mask = ((jax.random.uniform(ks[3], (B, S)) > 0.3).astype(jnp.int8)
                if use_mask else None)

        out = policy_loss(lp, olp, adv, mask, clip_eps=0.2,
                          token_level_mean=token_level_mean,
                          return_ratio=return_ratio)
        jax.block_until_ready(out)

        ref_l, ref_r = _reference(lp, olp, adv, mask, 0.2, token_level_mean)
        loss, second = out
        np.testing.assert_allclose(np.asarray(loss), ref_l, rtol=tol, atol=tol)
        if return_ratio:
            np.testing.assert_allclose(np.asarray(second), ref_r, rtol=tol, atol=tol)
        else:
            np.testing.assert_allclose(np.asarray(second), np.asarray(loss))

    # Tiny shapes consistent with the module ([batch, seq]).
    check(2, 8, jnp.float32, token_level_mean=False, return_ratio=True,  use_mask=True,  seed=0)
    check(2, 8, jnp.float32, token_level_mean=True,  return_ratio=True,  use_mask=True,  seed=1)
    check(2, 8, jnp.float32, token_level_mean=False, return_ratio=False, use_mask=True,  seed=2)
    # Misaligned shapes: exercises the unpadded cdiv grid, in-kernel tail
    # masking (rows and columns), and the sequence-parallel megacore split.
    check(6, 520, jnp.float32, token_level_mean=False, return_ratio=True, use_mask=True, seed=3)
    check(6, 520, jnp.float32, token_level_mean=True,  return_ratio=True, use_mask=True, seed=4)
    # action_mask=None fast path (mask DMA stream skipped entirely).
    check(6, 520, jnp.float32, token_level_mean=False, return_ratio=True, use_mask=False, seed=5)
    # bf16 inputs (recommended caller contract); also exercises batch-tile halving.
    check(12, 300, jnp.bfloat16, token_level_mean=False, return_ratio=True, use_mask=True,
          seed=6, tol=1e-4)

    print("KERNEL_OK")
</pallas_src>

<mosaic_0001>
module attributes {stable_mosaic.version = 11 : i64} {
  func.func @_policy_loss_kernel(%arg0: i32, %arg1: i32, %arg2: i32, %arg3: memref<8x128xf32, #tpu.memory_space<vmem>>, %arg4: memref<8x128xf32, #tpu.memory_space<vmem>>, %arg5: memref<8x128xf32, #tpu.memory_space<vmem>>, %arg6: memref<8x128xi8, #tpu.memory_space<vmem>>, %arg7: memref<8x384xf32, #tpu.memory_space<vmem>>) attributes {dimension_semantics = [#tpu.dimension_semantics<parallel>, #tpu.dimension_semantics<parallel>, #tpu.dimension_semantics<arbitrary>], iteration_bounds = array<i64: 1, 1, 1>, scalar_prefetch = 0 : i64, scratch_operands = 0 : i64, tpu.core_type = #tpu.core_type<tc>, window_params = [{transform_indices = @transform_0, window_bounds = array<i64: 8, 128>}, {transform_indices = @transform_1, window_bounds = array<i64: 8, 128>}, {transform_indices = @transform_2, window_bounds = array<i64: 8, 128>}, {transform_indices = @transform_3, window_bounds = array<i64: 8, 128>}, {transform_indices = @transform_4, window_bounds = array<i64: 8, 384>}]} {
    %c0_i32 = arith.constant 0 : i32
    %0 = arith.cmpi eq, %arg2, %c0_i32 : i32
    %1 = arith.extui %0 : i1 to i32
    %c0_i32_0 = arith.constant 0 : i32
    %2 = arith.cmpi ne, %1, %c0_i32_0 : i32
    scf.if %2 {
      %cst_17 = arith.constant 0.000000e+00 : f32
      %39 = vector.broadcast %cst_17 : f32 to vector<8x384xf32>
      %c0_18 = arith.constant 0 : index
      %c0_19 = arith.constant 0 : index
      %40 = vector.load %arg7[%c0_18, %c0_19] : memref<8x384xf32, #tpu.memory_space<vmem>>, vector<8x384xf32>
      tpu.vector_store %arg7[%c0_18, %c0_19], %39 {strides = array<i32>} : memref<8x384xf32, #tpu.memory_space<vmem>>, vector<8x384xf32>,
    } else {
    }
    %c1_i32 = arith.constant 1 : i32
    %3 = arith.muli %arg1, %c1_i32 : i32
    %4 = arith.addi %3, %arg2 : i32
    %c128_i32 = arith.constant 128 : i32
    %5 = arith.muli %4, %c128_i32 : i32
    %6 = tpu.iota {dimensions = array<i32: 1>} : vector<8x128xi32>
    %7 = vector.broadcast %5 : i32 to vector<8x128xi32>
    %8 = arith.addi %6, %7 : vector<8x128xi32>
    %c8_i32 = arith.constant 8 : i32
    %9 = vector.broadcast %c8_i32 : i32 to vector<8x128xi32>
    %10 = arith.cmpi slt, %8, %9 : vector<8x128xi32>
    %c0 = arith.constant 0 : index
    %c0_1 = arith.constant 0 : index
    %11 = vector.load %arg3[%c0, %c0_1] : memref<8x128xf32, #tpu.memory_space<vmem>>, vector<8x128xf32>
    %c0_2 = arith.constant 0 : index
    %c0_3 = arith.constant 0 : index
    %12 = vector.load %arg4[%c0_2, %c0_3] : memref<8x128xf32, #tpu.memory_space<vmem>>, vector<8x128xf32>
    %c0_4 = arith.constant 0 : index
    %c0_5 = arith.constant 0 : index
    %13 = vector.load %arg5[%c0_4, %c0_5] : memref<8x128xf32, #tpu.memory_space<vmem>>, vector<8x128xf32>
    %cst = arith.constant 0.000000e+00 : f32
    %14 = vector.broadcast %cst : f32 to vector<8x128xf32>
    %15 = arith.select %10, %13, %14 : vector<8x128xi1>, vector<8x128xf32>
    %c0_6 = arith.constant 0 : index
    %c0_7 = arith.constant 0 : index
    %16 = vector.load %arg6[%c0_6, %c0_7] : memref<8x128xi8, #tpu.memory_space<vmem>>, vector<8x128xi8>
    %17 = arith.sitofp %16 : vector<8x128xi8> to vector<8x128xf32>
    %cst_8 = arith.constant 0.000000e+00 : f32
    %18 = vector.broadcast %cst_8 : f32 to vector<8x128xf32>
    %19 = arith.select %10, %17, %18 : vector<8x128xi1>, vector<8x128xf32>
    %20 = arith.subf %11, %12 : vector<8x128xf32>
    %cst_9 = arith.constant 0.000000e+00 : f32
    %21 = vector.broadcast %cst_9 : f32 to vector<8x128xf32>
    %22 = arith.select %10, %20, %21 : vector<8x128xi1>, vector<8x128xf32>
    %23 = math.exp %22 : vector<8x128xf32>
    %24 = arith.mulf %23, %15 : vector<8x128xf32>
    %cst_10 = arith.constant 8.000000e-01 : f32
    %cst_11 = arith.constant 1.200000e+00 : f32
    %25 = vector.broadcast %cst_10 : f32 to vector<8x128xf32>
    %26 = arith.maximumf %25, %23 : vector<8x128xf32>
    %27 = vector.broadcast %cst_11 : f32 to vector<8x128xf32>
    %28 = arith.minimumf %27, %26 : vector<8x128xf32>
    %29 = arith.mulf %28, %15 : vector<8x128xf32>
    %30 = arith.minimumf %24, %29 : vector<8x128xf32>
    %cst_12 = arith.constant 0.000000e+00 : f32
    %31 = vector.broadcast %cst_12 : f32 to vector<8x128xf32>
    %32 = arith.subf %31, %30 : vector<8x128xf32>
    %c0_13 = arith.constant 0 : index
    %c0_14 = arith.constant 0 : index
    %33 = vector.load %arg7[%c0_13, %c0_14] : memref<8x384xf32, #tpu.memory_space<vmem>>, vector<8x384xf32>
    %34 = arith.mulf %32, %19 : vector<8x128xf32>
    %35 = arith.mulf %23, %19 : vector<8x128xf32>
    %36 = tpu.concatenate %34, %35, %19 in 1 : vector<8x128xf32>, vector<8x128xf32>, vector<8x128xf32> -> vector<8x384xf32>
    %37 = arith.addf %33, %36 : vector<8x384xf32>
    %c0_15 = arith.constant 0 : index
    %c0_16 = arith.constant 0 : index
    %38 = vector.load %arg7[%c0_15, %c0_16] : memref<8x384xf32, #tpu.memory_space<vmem>>, vector<8x384xf32>
    tpu.vector_store %arg7[%c0_15, %c0_16], %37 {strides = array<i32>} : memref<8x384xf32, #tpu.memory_space<vmem>>, vector<8x384xf32>,
    return
  }
  func.func @transform_0(%arg0: i32, %arg1: i32, %arg2: i32) -> (i32, i32) {
    %c1_i32 = arith.constant 1 : i32
    %0 = arith.muli %arg1, %c1_i32 : i32
    %1 = arith.addi %0, %arg2 : i32
    %c0_i32 = arith.constant 0 : i32
    %2 = arith.minsi %1, %c0_i32 : i32
    %c0_i32_0 = arith.constant 0 : i32
    return %arg0, %2 : i32, i32
  }
  func.func @transform_1(%arg0: i32, %arg1: i32, %arg2: i32) -> (i32, i32) {
    %c1_i32 = arith.constant 1 : i32
    %0 = arith.muli %arg1, %c1_i32 : i32
    %1 = arith.addi %0, %arg2 : i32
    %c0_i32 = arith.constant 0 : i32
    %2 = arith.minsi %1, %c0_i32 : i32
    %c0_i32_0 = arith.constant 0 : i32
    return %arg0, %2 : i32, i32
  }
  func.func @transform_2(%arg0: i32, %arg1: i32, %arg2: i32) -> (i32, i32) {
    %c1_i32 = arith.constant 1 : i32
    %0 = arith.muli %arg1, %c1_i32 : i32
    %1 = arith.addi %0, %arg2 : i32
    %c0_i32 = arith.constant 0 : i32
    %2 = arith.minsi %1, %c0_i32 : i32
    %c0_i32_0 = arith.constant 0 : i32
    return %arg0, %2 : i32, i32
  }
  func.func @transform_3(%arg0: i32, %arg1: i32, %arg2: i32) -> (i32, i32) {
    %c1_i32 = arith.constant 1 : i32
    %0 = arith.muli %arg1, %c1_i32 : i32
    %1 = arith.addi %0, %arg2 : i32
    %c0_i32 = arith.constant 0 : i32
    %2 = arith.minsi %1, %c0_i32 : i32
    %c0_i32_0 = arith.constant 0 : i32
    return %arg0, %2 : i32, i32
  }
  func.func @transform_4(%arg0: i32, %arg1: i32, %arg2: i32) -> (i32, i32) {
    %c0_i32 = arith.constant 0 : i32
    return %arg0, %arg1 : i32, i32
  }
}

</mosaic_0001>

<bundles_post_ra>
// kernel: tpu_custom_call.1
= control target key start
LH: loop header
LB: loop body
LE: loop exit
PB: predicated region body
PF: predicated region fallthrough
CT: control target
= control target key end

     0   :  { %9 = vsyncpa [#allocation3], 0  ;;  %s378_s0 = inlined_call_operand.hbm [shape: f32[2,8], index: 0, kind: input, shape index: {}]   ;;  %s379_s1 = inlined_call_operand.vmem [shape: f32[2,8], index: 1, kind: input, shape index: {}]   ;;  %s380_s2 = inlined_call_operand.vmem [shape: f32[2,8], index: 2, kind: input, shape index: {}]   ;;  %s381_s3 = inlined_call_operand.vmem [shape: s8[2,8], index: 3, kind: input, shape index: {}]   ;;  %s382_s4 = inlined_call_operand.hbm [shape: f32[2,384], index: 4, kind: output, shape index: {}]  }
   0x1   :  { %10 = vsyncpa [#allocation4], 0 }
   0x2   :  { %18 = vsyncadd [#allocation3], 96  ;;  %s306_s15 = smov [#allocation2]   ;;  %s258_s19 = scalar_lea.hbm %s378_s0, 32 }
   0x3   :  { %s21_s16 = sshll.u32 %s306_s15, 4  ;;  %p259_p0 = scmp.ne.s32.totalorder %s378_s0, %s258_s19  ;;  %s22_s16 = int_to_ptr.vmem [resolvable:$true] %s21_s16 }
   0x4   :  { %p262_p1 = scmp.lt.u32.totalorder %s258_s19, %s378_s0 }
   0x6   :  { %p264_p2 = pnand %p262_p1, %p259_p0 }
   0x8   :  { %267 = shalt.err (!%p264_p2)
}
   0x9   :  { %s268_s24 = scalar_lea.vmem %s22_s16, 32  ;;  %s272_s25 = scalar_lea.vmem %s22_s16, 128 }
   0xa   :  { %p269_p3 = scmp.ne.s32.totalorder %s22_s16, %s268_s24  ;;  %p273_p4 = scmp.lt.s32.totalorder %s22_s16, %s22_s16 }
   0xb   :  { %p274_p5 = scmp.lt.s32.totalorder %s272_s25, %s268_s24 }
   0xd   :  { %p275_p6 = por %p274_p5, %p273_p4 }
   0xf   :  { %p276_p7 = pnand %p275_p6, %p269_p3 }
  0x11   :  { %279 = shalt.err (!%p276_p7)
}
  0x12   :  { %s307_s26 = smov 32   ;;  %s308_s27 = smov 2  }
  0x13   :  { %27 = dma.hbm_to_vmem [thread:$0]  %s378_s0, 32, %s22_s16, [#allocation3], %s307_s26, %s307_s26, %s308_s27  }
  0x14   :  { %302 = dma.done.wait [#allocation3], 128  }
  0x15   :  { %303 = vsyncadd [#allocation3], 4294967168  ;;  %v128_v0 = vlaneseq  ;;  %v309_v1 = vmov 0.0   ;;  %v133_v3 = vld [vmem:[#allocation2] sm:$0xff]  ;;  %v310_v18 = vmov 1983009808  }
  0x16   :  { %122 = vst [vmem:[#allocation5] sm:$0x3f] %v309_v1  ;;  %123 = vst [vmem:[#allocation5 + $0x6] sm:$0x3f] %v309_v1  ;;  %v134_v4 = vld [vmem:[%s379_s1] sm:$0xff]  ;;  %v171_v19 = vunpack.c.l.s4 %v310_v18 }
  0x17   :  { %124 = vst [vmem:[#allocation5 + $0xc] sm:$0x3f] %v309_v1  ;;  %125 = vst [vmem:[#allocation5 + $0x12] sm:$0x3f] %v309_v1  ;;  %v129_v2 = vand.u32 127, %v128_v0  ;;  %v148_v5 = vsub.f32 %v133_v3, %v134_v4  ;;  %v135_v12 = vld [vmem:[%s380_s2] sm:$0xff] }
  0x18   :  { %v137_v8 = vld [vmem:[%s381_s3] sm:$0x1]  ;;  %v138_v9 = vld [vmem:[%s381_s3 + $0x1] sm:$0x1]  ;;  %v172_v24 = vunpack.c.0.s8 %v171_v19  ;;  %v174_v25 = vshrl.u32 %v128_v0, 7 }
  0x19   :  { %vm132_vm0 = vcmp.lt.s32.totalorder %v129_v2, 8  ;;  %v139_v10 = vunpack.c.0.s8 %v137_v8  ;;  %v140_v11 = vunpack.c.0.s8 %v138_v9 }
  0x1a   :  { %v149_v6 = vsel %vm132_vm0, %v148_v5, 0.0  ;;  %v136_v16 = vsel %vm132_vm0, %v135_v12, 0.0  ;;  %v175_v30 = vsub.s32 %v172_v24, %v174_v25 }
  0x1b   :  { %v150_v7 = vmul.f32 1.442695, %v149_v6  ;;  %v141_v13 = vcvt.s32.f32 %v139_v10  ;;  %v142_v14 = vcvt.s32.f32 %v140_v11 }
  0x1d   :  { %256 = vpow2.f32 %v150_v7  ;;  %v145_v20 = vcombine.low %v141_v13, %v142_v14  ;;  %v158_v37 = vld [vmem:[#allocation5] sm:$0x3f]  ;;  %v159_v40 = vld [vmem:[#allocation5 + $0x6] sm:$0x3f] }
  0x1e   :  { %v160_v41 = vld [vmem:[#allocation5 + $0xc] sm:$0x3f]  ;;  %v161_v42 = vld [vmem:[#allocation5 + $0x12] sm:$0x3f] }
  0x1f   :  { %v147_v26 = vsel %vm132_vm0, %v145_v20, 0.0 }
  0x20   :  { %v169_v31 = vcombine.high %v147_v26, %v147_v26  ;;  %v190_v34 = vrot.slane %v147_v26, %v175_v30 }
  0x22   :  { %v197_v36 = vrot.slane %v169_v31, %v175_v30 }
  0x27   :  { %v257_v15 = vpop.eup %256 }
  0x28   :  { %v153_v17 = vmax.f32 %v257_v15, 0.8  ;;  %v152_v21 = vmul.f32 %v257_v15, %v136_v16  ;;  %v163_v29 = vmul.f32 %v257_v15, %v147_v26 }
  0x2a   :  { %v154_v22 = vmin.f32 %v153_v17, 1.2 }
  0x2c   :  { %v155_v23 = vmul.f32 %v154_v22, %v136_v16 }
  0x2e   :  { %v156_v27 = vmin.f32 %v152_v21, %v155_v23 }
  0x30   :  { %v157_v28 = vsub.f32 0.0, %v156_v27 }
  0x32   :  { %v162_v32 = vmul.f32 %v157_v28, %v147_v26 }
  0x34   :  { %v167_v33 = vcombine.low %v162_v32, %v163_v29  ;;  %v168_v35 = vcombine.high %v162_v32, %v163_v29 }
  0x36   :  { %v176_v38 = vrot.slane %v167_v33, %v175_v30  ;;  %v183_v39 = vrot.slane %v168_v35, %v175_v30 }
  0x38   :  { %v198_v43 = vcombine.low %v176_v38, %v190_v34  ;;  %v199_v44 = vcombine.high %v176_v38, %v190_v34  ;;  %v200_v45 = vcombine.low %v183_v39, %v197_v36  ;;  %v201_v46 = vcombine.high %v183_v39, %v197_v36 }
  0x3a   :  { %v206_v47 = vadd.f32 %v198_v43, %v158_v37  ;;  %v207_v48 = vadd.f32 %v199_v44, %v159_v40  ;;  %v208_v49 = vadd.f32 %v200_v45, %v160_v41  ;;  %v209_v50 = vadd.f32 %v201_v46, %v161_v42 }
  0x3c   :  { %210 = vst [vmem:[#allocation5] sm:$0x3f] %v206_v47  ;;  %211 = vst [vmem:[#allocation5 + $0x6] sm:$0x3f] %v207_v48 }
  0x3d   :  { %212 = vst [vmem:[#allocation5 + $0xc] sm:$0x3f] %v208_v49  ;;  %213 = vst [vmem:[#allocation5 + $0x12] sm:$0x3f] %v209_v50 }
  0x3e   :  { %218 = vsyncadd [#allocation4], 288  ;;  %s311_s1 = smov [#allocation5]  }
  0x3f   :  { %s219_s2 = sshll.u32 %s311_s1, 4  ;;  %s220_s2 = int_to_ptr.vmem [resolvable:$true] %s219_s2 }
  0x40   :  { %s280_s3 = scalar_lea.vmem %s220_s2, 96  ;;  %s284_s11 = scalar_lea.vmem %s220_s2, 384 }
  0x41   :  { %p281_p8 = scmp.ne.s32.totalorder %s220_s2, %s280_s3  ;;  %p285_p9 = scmp.lt.s32.totalorder %s220_s2, %s220_s2 }
  0x42   :  { %p286_p10 = scmp.lt.s32.totalorder %s284_s11, %s280_s3 }
  0x44   :  { %p287_p11 = por %p286_p10, %p285_p9 }
  0x46   :  { %p288_p12 = pnand %p287_p11, %p281_p8 }
  0x48   :  { %291 = shalt.err (!%p288_p12)
}
  0x49   :  { %s292_s14 = scalar_lea.hbm %s382_s4, 96 }
  0x4a   :  { %p293_p13 = scmp.ne.s32.totalorder %s382_s4, %s292_s14  ;;  %p296_p0 = scmp.lt.u32.totalorder %s292_s14, %s382_s4 }
  0x4c   :  { %p298_p1 = pnand %p296_p0, %p293_p13 }
  0x4e   :  { %301 = shalt.err (!%p298_p1)
}
  0x4f   :  { %s312_s19 = smov 96   ;;  %s313_s20 = smov 6  }
  0x50   :  { %225 = dma.vmem_to_hbm [thread:$0]  %s220_s2, 96, %s382_s4, [#allocation4], %s312_s19, %s312_s19, %s313_s20  }
  0x51   :  { %304 = dma.done.wait [#allocation4], 384  }
  0x52   :  { %305 = vsyncadd [#allocation4], 4294966912 }
  0x53   :  { %229 = vsyncpa [#allocation3], 1 }
  0x54   :  { %230 = vsyncpa [#allocation4], 1 }

</bundles_post_ra>
